<compile_context>
chip_gen: v7x
topology: tpu7x:2x2x1
jax: 0.10.0
libtpu: 0.0.40
codegen_flags: <defaults>
</compile_context>

<pallas_src>
import jax
import jax.numpy as jnp
from jax.experimental import pallas as pl
from jax.experimental.pallas import tpu as pltpu

OUT_PAD = 128  # lane-dense padded width of the final layer / output block


def _round_up(a, m):
    return (a + m - 1) // m * m


def mlp_kernel(x_ref,
               w1_ref, b1_ref,
               w2_ref, b2_ref,
               w3_ref, b3_ref,
               w4_ref, b4_ref,
               o_ref):
    # Layer 0: Linear(17 -> 50) + Sin
    h = jnp.dot(x_ref[...], w1_ref[...], preferred_element_type=jnp.float32)
    h = jnp.sin(h + b1_ref[...])
    # Layer 1: Linear(50 -> 50) + Sin (+ Dropout == identity in eval)
    h = jnp.dot(h, w2_ref[...], preferred_element_type=jnp.float32)
    h = jnp.sin(h + b2_ref[...])
    # Layer 2: Linear(50 -> 50) + Sin (+ Dropout == identity in eval)
    h = jnp.dot(h, w3_ref[...], preferred_element_type=jnp.float32)
    h = jnp.sin(h + b3_ref[...])
    # Layer 3: Linear(50 -> OUT_PAD) (zero-padded from 50 -> 1), no activation.
    out = jnp.dot(h, w4_ref[...], preferred_element_type=jnp.float32)
    o_ref[...] = (out + b4_ref[...]).astype(o_ref.dtype)


def mlp_forward(x, params, out_dim=1, tile_b=512):
    """x: (B, input_dim) f32.

    params: list of (W_t, b_row) with W_t=(in, out), b_row=(1, out); the last
    layer is zero-padded to OUT_PAD output columns for a lane-dense store.
    Returns (B, out_dim) f32.
    """
    (w1, b1), (w2, b2), (w3, b3), (w4p, b4p) = params
    B, in_dim = x.shape

    # Tile size: multiple of 8, no larger than (padded) batch.
    tile_b = min(tile_b, _round_up(B, 8))
    tile_b = _round_up(tile_b, 8)
    Bp = _round_up(B, tile_b)
    if Bp != B:
        x = jnp.pad(x, ((0, Bp - B), (0, 0)))
    grid = (Bp // tile_b,)

    def full_spec(arr):
        # Weights / biases: whole array resident in VMEM, same block every step.
        return pl.BlockSpec(arr.shape, lambda i: (0, 0))

    out_padded = pl.pallas_call(
        mlp_kernel,
        out_shape=jax.ShapeDtypeStruct((Bp, OUT_PAD), jnp.float32),
        grid=grid,
        in_specs=[
            pl.BlockSpec((tile_b, in_dim), lambda i: (i, 0)),  # x tile
            full_spec(w1), full_spec(b1),
            full_spec(w2), full_spec(b2),
            full_spec(w3), full_spec(b3),
            full_spec(w4p), full_spec(b4p),
        ],
        out_specs=pl.BlockSpec((tile_b, OUT_PAD), lambda i: (i, 0)),
        compiler_params=pltpu.CompilerParams(
            dimension_semantics=("parallel",)),
    )(x, w1, b1, w2, b2, w3, b3, w4p, b4p)

    return out_padded[:B, :out_dim]


def xavier_normal(key, shape):
    # shape = (out_features, in_features) as in torch nn.Linear.weight
    fan_out, fan_in = shape
    std = (2.0 / (fan_in + fan_out)) ** 0.5
    return std * jax.random.normal(key, shape, dtype=jnp.float32)


def make_params(key, input_dim=17, hidden_dim=50, output_dim=1, layers_num=4):
    dims = [input_dim] + [hidden_dim] * (layers_num - 1) + [output_dim]
    params = []
    for i in range(layers_num):
        key, kw, kb = jax.random.split(key, 3)
        in_d, out_d = dims[i], dims[i + 1]
        w = xavier_normal(kw, (out_d, in_d))               # torch layout (out, in)
        bound = 1.0 / (in_d ** 0.5)                        # torch default bias init
        b = jax.random.uniform(kb, (out_d,), jnp.float32, -bound, bound)
        # pre-transpose W to (in, out) and reshape bias to (1, out) for the kernel
        w_t = jnp.asarray(w.T)
        b_row = b.reshape(1, out_d)
        if i == layers_num - 1:
            # Zero-pad the final layer to OUT_PAD columns for a lane-dense store.
            w_t = jnp.pad(w_t, ((0, 0), (0, OUT_PAD - out_d)))
            b_row = jnp.pad(b_row, ((0, 0), (0, OUT_PAD - out_d)))
        params.append((w_t, b_row))
    return params


def mlp_reference(x, params, out_dim=1):
    h = x
    n = len(params)
    for i, (w, b) in enumerate(params):
        h = h @ w + b
        if i < n - 1:
            h = jnp.sin(h)
    return h[:, :out_dim]


if __name__ == "__main__":
    key = jax.random.PRNGKey(0)
    key, kx, kx2 = jax.random.split(key, 3)

    input_dim, output_dim = 17, 1
    params = make_params(key, input_dim=input_dim, hidden_dim=50,
                         output_dim=output_dim, layers_num=4)

    # Small shape consistent with the module (batch=8, input_dim=17).
    B = 8
    x = jax.random.normal(kx, (B, input_dim), dtype=jnp.float32)
    out = jax.block_until_ready(mlp_forward(x, params, out_dim=output_dim))
    ref = mlp_reference(x, params, out_dim=output_dim)
    assert out.shape == (B, output_dim)
    assert jnp.allclose(out, ref, atol=1e-5, rtol=1e-5)

    # Exercise the batch grid + padding path (B not a multiple of the tile).
    B2 = 300
    x2 = jax.random.normal(kx2, (B2, input_dim), dtype=jnp.float32)
    out2 = jax.block_until_ready(mlp_forward(x2, params, out_dim=output_dim,
                                             tile_b=128))
    ref2 = mlp_reference(x2, params, out_dim=output_dim)
    assert out2.shape == (B2, output_dim)
    assert jnp.allclose(out2, ref2, atol=1e-5, rtol=1e-5)

    print("KERNEL_OK")
</pallas_src>

<mosaic_0001>
module attributes {stable_mosaic.version = 11 : i64} {
  func.func @mlp_kernel(%arg0: i32, %arg1: memref<8x17xf32, #tpu.memory_space<vmem>>, %arg2: memref<17x50xf32, #tpu.memory_space<vmem>>, %arg3: memref<1x50xf32, #tpu.memory_space<vmem>>, %arg4: memref<50x50xf32, #tpu.memory_space<vmem>>, %arg5: memref<1x50xf32, #tpu.memory_space<vmem>>, %arg6: memref<50x50xf32, #tpu.memory_space<vmem>>, %arg7: memref<1x50xf32, #tpu.memory_space<vmem>>, %arg8: memref<50x128xf32, #tpu.memory_space<vmem>>, %arg9: memref<1x128xf32, #tpu.memory_space<vmem>>, %arg10: memref<8x128xf32, #tpu.memory_space<vmem>>) attributes {dimension_semantics = [#tpu.dimension_semantics<parallel>], iteration_bounds = array<i64: 1>, scalar_prefetch = 0 : i64, scratch_operands = 0 : i64, tpu.core_type = #tpu.core_type<tc>, window_params = [{transform_indices = @transform_0, window_bounds = array<i64: 8, 17>}, {pipeline_mode = #tpu.pipeline_mode<synchronous>, transform_indices = @transform_1, window_bounds = array<i64: 17, 50>}, {pipeline_mode = #tpu.pipeline_mode<synchronous>, transform_indices = @transform_2, window_bounds = array<i64: 1, 50>}, {pipeline_mode = #tpu.pipeline_mode<synchronous>, transform_indices = @transform_3, window_bounds = array<i64: 50, 50>}, {pipeline_mode = #tpu.pipeline_mode<synchronous>, transform_indices = @transform_4, window_bounds = array<i64: 1, 50>}, {pipeline_mode = #tpu.pipeline_mode<synchronous>, transform_indices = @transform_5, window_bounds = array<i64: 50, 50>}, {pipeline_mode = #tpu.pipeline_mode<synchronous>, transform_indices = @transform_6, window_bounds = array<i64: 1, 50>}, {pipeline_mode = #tpu.pipeline_mode<synchronous>, transform_indices = @transform_7, window_bounds = array<i64: 50, 128>}, {pipeline_mode = #tpu.pipeline_mode<synchronous>, transform_indices = @transform_8, window_bounds = array<i64: 1, 128>}, {transform_indices = @transform_9, window_bounds = array<i64: 8, 128>}]} {
    %c0 = arith.constant 0 : index
    %c0_0 = arith.constant 0 : index
    %0 = vector.load %arg1[%c0, %c0_0] : memref<8x17xf32, #tpu.memory_space<vmem>>, vector<8x17xf32>
    %c0_1 = arith.constant 0 : index
    %c0_2 = arith.constant 0 : index
    %1 = vector.load %arg2[%c0_1, %c0_2] : memref<17x50xf32, #tpu.memory_space<vmem>>, vector<17x50xf32>
    %cst = arith.constant dense<0.000000e+00> : vector<8x50xf32>
    %2 = tpu.matmul %0, %1, %cst {dimension_numbers = #tpu.dot_dimension_numbers<[1], [0], [0], [1], [0, 0, 1, 1], [], []>} : vector<8x17xf32>, vector<17x50xf32>, vector<8x50xf32> -> vector<8x50xf32>
    %c0_3 = arith.constant 0 : index
    %c0_4 = arith.constant 0 : index
    %3 = vector.load %arg3[%c0_3, %c0_4] : memref<1x50xf32, #tpu.memory_space<vmem>>, vector<1x50xf32>
    %4 = vector.broadcast %3 : vector<1x50xf32> to vector<8x50xf32>
    %5 = arith.addf %2, %4 : vector<8x50xf32>
    %6 = math.sin %5 : vector<8x50xf32>
    %c0_5 = arith.constant 0 : index
    %c0_6 = arith.constant 0 : index
    %7 = vector.load %arg4[%c0_5, %c0_6] : memref<50x50xf32, #tpu.memory_space<vmem>>, vector<50x50xf32>
    %cst_7 = arith.constant dense<0.000000e+00> : vector<8x50xf32>
    %8 = tpu.matmul %6, %7, %cst_7 {dimension_numbers = #tpu.dot_dimension_numbers<[1], [0], [0], [1], [0, 0, 1, 1], [], []>} : vector<8x50xf32>, vector<50x50xf32>, vector<8x50xf32> -> vector<8x50xf32>
    %c0_8 = arith.constant 0 : index
    %c0_9 = arith.constant 0 : index
    %9 = vector.load %arg5[%c0_8, %c0_9] : memref<1x50xf32, #tpu.memory_space<vmem>>, vector<1x50xf32>
    %10 = vector.broadcast %9 : vector<1x50xf32> to vector<8x50xf32>
    %11 = arith.addf %8, %10 : vector<8x50xf32>
    %12 = math.sin %11 : vector<8x50xf32>
    %c0_10 = arith.constant 0 : index
    %c0_11 = arith.constant 0 : index
    %13 = vector.load %arg6[%c0_10, %c0_11] : memref<50x50xf32, #tpu.memory_space<vmem>>, vector<50x50xf32>
    %cst_12 = arith.constant dense<0.000000e+00> : vector<8x50xf32>
    %14 = tpu.matmul %12, %13, %cst_12 {dimension_numbers = #tpu.dot_dimension_numbers<[1], [0], [0], [1], [0, 0, 1, 1], [], []>} : vector<8x50xf32>, vector<50x50xf32>, vector<8x50xf32> -> vector<8x50xf32>
    %c0_13 = arith.constant 0 : index
    %c0_14 = arith.constant 0 : index
    %15 = vector.load %arg7[%c0_13, %c0_14] : memref<1x50xf32, #tpu.memory_space<vmem>>, vector<1x50xf32>
    %16 = vector.broadcast %15 : vector<1x50xf32> to vector<8x50xf32>
    %17 = arith.addf %14, %16 : vector<8x50xf32>
    %18 = math.sin %17 : vector<8x50xf32>
    %c0_15 = arith.constant 0 : index
    %c0_16 = arith.constant 0 : index
    %19 = vector.load %arg8[%c0_15, %c0_16] : memref<50x128xf32, #tpu.memory_space<vmem>>, vector<50x128xf32>
    %cst_17 = arith.constant dense<0.000000e+00> : vector<8x128xf32>
    %20 = tpu.matmul %18, %19, %cst_17 {dimension_numbers = #tpu.dot_dimension_numbers<[1], [0], [0], [1], [0, 0, 1, 1], [], []>} : vector<8x50xf32>, vector<50x128xf32>, vector<8x128xf32> -> vector<8x128xf32>
    %c0_18 = arith.constant 0 : index
    %c0_19 = arith.constant 0 : index
    %21 = vector.load %arg9[%c0_18, %c0_19] : memref<1x128xf32, #tpu.memory_space<vmem>>, vector<1x128xf32>
    %22 = vector.broadcast %21 : vector<1x128xf32> to vector<8x128xf32>
    %23 = arith.addf %20, %22 : vector<8x128xf32>
    %c0_20 = arith.constant 0 : index
    %c0_21 = arith.constant 0 : index
    %24 = vector.load %arg10[%c0_20, %c0_21] : memref<8x128xf32, #tpu.memory_space<vmem>>, vector<8x128xf32>
    tpu.vector_store %arg10[%c0_20, %c0_21], %23 {strides = array<i32>} : memref<8x128xf32, #tpu.memory_space<vmem>>, vector<8x128xf32>,
    return
  }
  func.func @transform_0(%arg0: i32) -> (i32, i32) {
    %c0_i32 = arith.constant 0 : i32
    %c0_i32_0 = arith.constant 0 : i32
    return %arg0, %c0_i32 : i32, i32
  }
  func.func @transform_1(%arg0: i32) -> (i32, i32) {
    %c0_i32 = arith.constant 0 : i32
    %c0_i32_0 = arith.constant 0 : i32
    %c0_i32_1 = arith.constant 0 : i32
    return %c0_i32, %c0_i32_0 : i32, i32
  }
  func.func @transform_2(%arg0: i32) -> (i32, i32) {
    %c0_i32 = arith.constant 0 : i32
    %c0_i32_0 = arith.constant 0 : i32
    %c0_i32_1 = arith.constant 0 : i32
    return %c0_i32, %c0_i32_0 : i32, i32
  }
  func.func @transform_3(%arg0: i32) -> (i32, i32) {
    %c0_i32 = arith.constant 0 : i32
    %c0_i32_0 = arith.constant 0 : i32
    %c0_i32_1 = arith.constant 0 : i32
    return %c0_i32, %c0_i32_0 : i32, i32
  }
  func.func @transform_4(%arg0: i32) -> (i32, i32) {
    %c0_i32 = arith.constant 0 : i32
    %c0_i32_0 = arith.constant 0 : i32
    %c0_i32_1 = arith.constant 0 : i32
    return %c0_i32, %c0_i32_0 : i32, i32
  }
  func.func @transform_5(%arg0: i32) -> (i32, i32) {
    %c0_i32 = arith.constant 0 : i32
    %c0_i32_0 = arith.constant 0 : i32
    %c0_i32_1 = arith.constant 0 : i32
    return %c0_i32, %c0_i32_0 : i32, i32
  }
  func.func @transform_6(%arg0: i32) -> (i32, i32) {
    %c0_i32 = arith.constant 0 : i32
    %c0_i32_0 = arith.constant 0 : i32
    %c0_i32_1 = arith.constant 0 : i32
    return %c0_i32, %c0_i32_0 : i32, i32
  }
  func.func @transform_7(%arg0: i32) -> (i32, i32) {
    %c0_i32 = arith.constant 0 : i32
    %c0_i32_0 = arith.constant 0 : i32
    %c0_i32_1 = arith.constant 0 : i32
    return %c0_i32, %c0_i32_0 : i32, i32
  }
  func.func @transform_8(%arg0: i32) -> (i32, i32) {
    %c0_i32 = arith.constant 0 : i32
    %c0_i32_0 = arith.constant 0 : i32
    %c0_i32_1 = arith.constant 0 : i32
    return %c0_i32, %c0_i32_0 : i32, i32
  }
  func.func @transform_9(%arg0: i32) -> (i32, i32) {
    %c0_i32 = arith.constant 0 : i32
    %c0_i32_0 = arith.constant 0 : i32
    return %arg0, %c0_i32 : i32, i32
  }
}

</mosaic_0001>

<bundles_post_ra>
// kernel: tpu_custom_call.1
= control target key start
LH: loop header
LB: loop body
LE: loop exit
PB: predicated region body
PF: predicated region fallthrough
CT: control target
= control target key end

     0   :  { %14 = vsyncpa [#allocation3], 0  ;;  %s1400_s0 = inlined_call_operand.hbm [shape: f32[8,17], index: 0, kind: input, shape index: {}]   ;;  %s1401_s1 = inlined_call_operand.hbm [shape: f32[17,50], index: 1, kind: input, shape index: {}]   ;;  %s1402_s2 = inlined_call_operand.vmem [shape: f32[1,50], index: 2, kind: input, shape index: {}]   ;;  %s1403_s3 = inlined_call_operand.hbm [shape: f32[50,50], index: 3, kind: input, shape index: {}]   ;;  %s1404_s4 = inlined_call_operand.vmem [shape: f32[1,50], index: 4, kind: input, shape index: {}]   ;;  %s1405_s5 = inlined_call_operand.hbm [shape: f32[50,50], index: 5, kind: input, shape index: {}]   ;;  %s1406_s6 = inlined_call_operand.vmem [shape: f32[1,50], index: 6, kind: input, shape index: {}]   ;;  %s1407_s7 = inlined_call_operand.hbm [shape: f32[50,128], index: 7, kind: input, shape index: {}]   ;;  %s1408_s8 = inlined_call_operand.vmem [shape: f32[1,128], index: 8, kind: input, shape index: {}]   ;;  %s1409_s9 = inlined_call_operand.hbm [shape: f32[8,128], index: 9, kind: output, shape index: {}]  }
   0x1   :  { %15 = vsyncpa [#allocation6], 0 }
   0x2   :  { %16 = vsyncpa [#allocation9], 0 }
   0x3   :  { %17 = vsyncpa [#allocation4], 0  ;;  %s1113_s30 = smov [#allocation5]   ;;  %s973_s13 = scalar_lea.hbm %s1401_s1, 384 }
   0x4   :  { %s33_s10 = sshll.u32 %s1113_s30, 4  ;;  %p974_p0 = scmp.ne.s32.totalorder %s1401_s1, %s973_s13  ;;  %s34_s10 = int_to_ptr.vmem [resolvable:$true] %s33_s10 }
   0x5   :  { %p977_p1 = scmp.lt.u32.totalorder %s973_s13, %s1401_s1 }
   0x7   :  { %p979_p2 = pnand %p977_p1, %p974_p0 }
   0x9   :  { %982 = shalt.err (!%p979_p2)
}
   0xa   :  { %s983_s18 = scalar_lea.vmem %s34_s10, 384  ;;  %p988_p4 = scmp.lt.s32.totalorder %s34_s10, %s34_s10 }
   0xb   :  { %p984_p3 = scmp.ne.s32.totalorder %s34_s10, %s983_s18  ;;  %p989_p5 = scmp.lt.s32.totalorder %s983_s18, %s983_s18 }
   0xd   :  { %p990_p6 = por %p989_p5, %p988_p4 }
   0xf   :  { %p991_p7 = pnand %p990_p6, %p984_p3 }
  0x11   :  { %994 = shalt.err (!%p991_p7)
}
  0x12   :  { %s1114_s19 = smov 128   ;;  %s1115_s20 = smov 8  }
  0x13   :  { %39 = dma.hbm_to_vmem [thread:$0]  %s1401_s1, 384, %s34_s10, [#allocation6], %s1114_s19, %s1114_s19, %s1115_s20  }
  0x14   :  { %s1116_s23 = smov [#allocation8]   ;;  %s1117_s25 = smov [#allocation2]  }
  0x15   :  { %s61_s24 = sshll.u32 %s1116_s23, 4  ;;  %s24_s26 = sshll.u32 %s1117_s25, 4  ;;  %s62_s24 = int_to_ptr.vmem [resolvable:$true] %s61_s24  ;;  %s25_s26 = int_to_ptr.vmem [resolvable:$true] %s24_s26 }
  0x16   :  { %s995_s29 = scalar_lea.hbm %s1405_s5, 896 }
  0x17   :  { %p996_p8 = scmp.ne.s32.totalorder %s1405_s5, %s995_s29  ;;  %p999_p9 = scmp.lt.u32.totalorder %s995_s29, %s1405_s5 }
  0x19   :  { %p1001_p10 = pnand %p999_p9, %p996_p8 }
  0x1b   :  { %1004 = shalt.err (!%p1001_p10)
}
  0x1c   :  { %s1005_s1 = scalar_lea.vmem %s62_s24, 896  ;;  %p1010_p12 = scmp.lt.s32.totalorder %s62_s24, %s62_s24 }
  0x1d   :  { %p1006_p11 = scmp.ne.s32.totalorder %s62_s24, %s1005_s1  ;;  %p1011_p13 = scmp.lt.s32.totalorder %s1005_s1, %s1005_s1 }
  0x1f   :  { %p1012_p0 = por %p1011_p13, %p1010_p12 }
  0x21   :  { %p1013_p1 = pnand %p1012_p0, %p1006_p11 }
  0x23   :  { %1016 = shalt.err (!%p1013_p1)
}
  0x24   :  { %67 = dma.hbm_to_vmem [thread:$0]  %s1405_s5, 896, %s62_s24, [#allocation9], %s1114_s19, %s1114_s19, %s1115_s20  }
  0x25   :  { %s1017_s17 = scalar_lea.hbm %s1400_s0, 128 }
  0x26   :  { %p1018_p2 = scmp.ne.s32.totalorder %s1400_s0, %s1017_s17  ;;  %p1021_p3 = scmp.lt.u32.totalorder %s1017_s17, %s1400_s0 }
  0x28   :  { %p1023_p4 = pnand %p1021_p3, %p1018_p2 }
  0x2a   :  { %1026 = shalt.err (!%p1023_p4)
}
  0x2b   :  { %s1027_s25 = scalar_lea.vmem %s25_s26, 128  ;;  %p1032_p6 = scmp.lt.s32.totalorder %s25_s26, %s25_s26 }
  0x2c   :  { %p1028_p5 = scmp.ne.s32.totalorder %s25_s26, %s1027_s25  ;;  %p1033_p7 = scmp.lt.s32.totalorder %s1027_s25, %s1027_s25 }
  0x2e   :  { %p1034_p8 = por %p1033_p7, %p1032_p6 }
  0x30   :  { %p1035_p9 = pnand %p1034_p8, %p1028_p5 }
  0x32   :  { %1038 = shalt.err (!%p1035_p9)
}
  0x33   :  { %27 = dma.hbm_to_vmem [thread:$0]  %s1400_s0, 128, %s25_s26, [#allocation3]  }
  0x34   :  { %s1118_s27 = smov [#allocation7]   ;;  %s1119_s29 = smov [#allocation10]  }
  0x35   :  { %s47_s28 = sshll.u32 %s1118_s27, 4  ;;  %s75_s30 = sshll.u32 %s1119_s29, 4  ;;  %s48_s28 = int_to_ptr.vmem [resolvable:$true] %s47_s28  ;;  %s76_s30 = int_to_ptr.vmem [resolvable:$true] %s75_s30 }
  0x36   :  { %s1039_s13 = scalar_lea.hbm %s1403_s3, 896 }
  0x37   :  { %p1040_p10 = scmp.ne.s32.totalorder %s1403_s3, %s1039_s13  ;;  %p1043_p11 = scmp.lt.u32.totalorder %s1039_s13, %s1403_s3 }
  0x39   :  { %p1045_p12 = pnand %p1043_p11, %p1040_p10 }
  0x3b   :  { %1048 = shalt.err (!%p1045_p12)
}
  0x3c   :  { %s1049_s0 = scalar_lea.vmem %s48_s28, 896  ;;  %p1054_p0 = scmp.lt.s32.totalorder %s48_s28, %s48_s28 }
  0x3d   :  { %p1050_p13 = scmp.ne.s32.totalorder %s48_s28, %s1049_s0  ;;  %p1055_p1 = scmp.lt.s32.totalorder %s1049_s0, %s1049_s0 }
  0x3f   :  { %p1056_p2 = por %p1055_p1, %p1054_p0 }
  0x41   :  { %p1057_p3 = pnand %p1056_p2, %p1050_p13 }
  0x43   :  { %1060 = shalt.err (!%p1057_p3)
}
  0x44   :  { %53 = dma.hbm_to_vmem [thread:$0]  %s1403_s3, 896, %s48_s28, [#allocation6], %s1114_s19, %s1114_s19, %s1115_s20  }
  0x45   :  { %s1061_s21 = scalar_lea.hbm %s1407_s7, 896 }
  0x46   :  { %p1062_p4 = scmp.ne.s32.totalorder %s1407_s7, %s1061_s21  ;;  %p1065_p5 = scmp.lt.u32.totalorder %s1061_s21, %s1407_s7 }
  0x48   :  { %p1067_p6 = pnand %p1065_p5, %p1062_p4 }
  0x4a   :  { %1070 = shalt.err (!%p1067_p6)
}
  0x4b   :  { %s1071_s24 = scalar_lea.vmem %s76_s30, 896  ;;  %p1076_p8 = scmp.lt.s32.totalorder %s76_s30, %s76_s30 }
  0x4c   :  { %p1072_p7 = scmp.ne.s32.totalorder %s76_s30, %s1071_s24  ;;  %p1077_p9 = scmp.lt.s32.totalorder %s1071_s24, %s1071_s24 }
  0x4e   :  { %p1078_p10 = por %p1077_p9, %p1076_p8 }
  0x50   :  { %p1079_p11 = pnand %p1078_p10, %p1072_p7 }
  0x52   :  { %1082 = shalt.err (!%p1079_p11)
}
  0x53   :  { %81 = dma.hbm_to_vmem [thread:$0]  %s1407_s7, 896, %s76_s30, [#allocation9], %s1114_s19, %s1114_s19, %s1115_s20  }
  0x54   :  { %1105 = dma.done.wait [#allocation3], 128  }
  0x55   :  { %1106 = vsyncadd [#allocation3], 4294967168 }
  0x56   :  { %1107 = dma.done.wait [#allocation6], 1280  }
  0x57   :  { %1108 = vsyncadd [#allocation6], 4294966016 }
  0x58   :  { %1109 = dma.done.wait [#allocation9], 1792  }
  0x59   :  { %1110 = vsyncadd [#allocation9], 4294965504  ;;  %v1120_v0 = vmov 0.0|0.0   ;;  %vm1121_vm0 = vmmov 0   ;;  %v1122_v1 = vmov 0.0   ;;  %v100_v2 = vld [vmem:[#allocation5] sm:$0xff] }
  0x5a   :  { %902 = vmatprep.subr.bf16.mxu0 %v1120_v0  ;;  %848 = vmatprep.mubr.msk.f32.mxu0 %vm1121_vm0, %v1122_v1  ;;  %v101_v3 = vld [vmem:[#allocation5 + $0x8] sm:$0xff]  ;;  %v102_v5 = vld [vmem:[#allocation5 + $0x10] sm:$0x1]  ;;  %vm114_vm1 = vcmask 1040384   ;;  %v99_v6 = vld [vmem:[#allocation2] sm:$0xff]  ;;  %vm110_vm2 = vcmask 138240  }
  0x5b   :  { %905 = vmatprep.subr.bf16.mxu1 %v1120_v0  ;;  %865 = vmatprep.mubr.msk.f32.mxu1 %vm1121_vm0, %v1122_v1  ;;  %v903_v4 = vpack.c.bf16 %v101_v3, %v100_v2  ;;  %v292_v7 = vld [vmem:[#allocation7] sm:$0xff]  ;;  %v293_v8 = vld [vmem:[#allocation7 + $0x8] sm:$0xff]  ;;  %v294_v9 = vld [vmem:[#allocation7 + $0x10] sm:$0xff]  ;;  %vm310_vm3 = vcmask 1041408   ;;  %v1123_v31 = vmov 683565275  }
  0x5c   :  { %v906_v10 = vpack.c.bf16 %v293_v8, %v292_v7  ;;  %v295_v11 = vld [vmem:[#allocation7 + $0x18] sm:$0xff]  ;;  %v296_v13 = vld [vmem:[#allocation7 + $0x20] sm:$0xff]  ;;  %v297_v14 = vld [vmem:[#allocation7 + $0x28] sm:$0xff]  ;;  %v1124_v33 = vmov 2475754826   ;;  %s1129_s30 = smov [#allocation11]  }
  0x5d   :  { %904 = vmatpush3.bf16.msra.mxu0 %v903_v4  ;;  %v909_v12 = vpack.c.bf16 %v295_v11, %v294_v9  ;;  %v912_v15 = vpack.c.bf16 %v297_v14, %v296_v13  ;;  %v298_v16 = vld [vmem:[#allocation7 + $0x30] sm:$0x3]  ;;  %v790_v17 = vld [vmem:[%s1402_s2] ss:$0 sm:$0xff]  ;;  %v1125_v36 = vmov 2131351028  }
  0x5e   :  { %846 = vmatprep.subr.mxu0 %v1122_v1  ;;  %907 = vmatpush3.bf16.msra.mxu1 %v906_v10  ;;  %v1126_v39 = vmov 2102212464   ;;  %v1127_v42 = vmov 920167782   ;;  %v1128_v45 = vmov 1326507024  }
  0x5f   :  { %908 = vmatprep.subr.bf16.mxu1 %v1120_v0  ;;  %s779_s11 = sshll.u32 %s1129_s30, 4  ;;  %s780_s11 = int_to_ptr.vmem [resolvable:$true] %s779_s11 }
  0x60   :  { %s1083_s12 = scalar_lea.vmem %s780_s11, 128  ;;  %p1088_p13 = scmp.lt.s32.totalorder %s780_s11, %s780_s11 }
  0x61   :  { %847 = vmatpush3.msk.msra.mxu0 %vm114_vm1, %v102_v5  ;;  %vm306_vm1 = vcmask 408576   ;;  %p1084_p12 = scmp.ne.s32.totalorder %s780_s11, %s1083_s12  ;;  %p1089_p0 = scmp.lt.s32.totalorder %s1083_s12, %s1083_s12 }
  0x62   :  { %849 = vmatmul.mubr.msk.f32.vlgmr.msra.gmra.mrb[0].mxu0 %vm110_vm2, %v99_v6  ;;  %914 = vmatprep.subr.bf16.mxu0 %v1120_v0 }
  0x63   :  { %882 = vmatprep.mubr.msk.f32.mxu0 %vm1121_vm0, %v1122_v1  ;;  %910 = vmatpush3.bf16.msra.mxu1 %v909_v12  ;;  %p1090_p1 = por %p1089_p0, %p1088_p13 }
  0x64   :  { %911 = vmatprep.subr.bf16.mxu1 %v1120_v0 }
  0x65   :  { %p1091_p2 = pnand %p1090_p1, %p1084_p12 }
  0x67   :  { %913 = vmatpush3.bf16.msra.mxu1 %v912_v15 }
  0x68   :  { %863 = vmatprep.subr.mxu1 %v1122_v1 }
  0x6b   :  { %864 = vmatpush3.msk.msra.mxu1 %vm310_vm3, %v298_v16 }
  0x6c   :  { %923 = vmatprep.subr.bf16.mxu1 %v1120_v0 }
 0x135   :  { %v184_v18 = vpop.f32.mrb[0].mxu0 }
 0x136   :  { %v1270_v19 = vadd.f32 %v790_v17, %v184_v18  ;;  %v850_v20 = vpop.f32.mrb[1].mxu0 }
 0x138   :  { %v191_v21 = vand.u32 2139095040, %v1270_v19  ;;  %v188_v25 = vand.u32 2147483647, %v1270_v19  ;;  %vm190_vm11 = vcmp.lt.s32.totalorder %v1270_v19, 0  ;;  %vm280_vm2 = vweird.f32 %v1270_v19 }
 0x13a   :  { %v192_v22 = vshrl.u32 %v191_v21, 23  ;;  %v195_v28 = vand.u32 8388607, %v188_v25  ;;  %vm189_vm12 = vcmp.le.f32.partialorder %v188_v25, 0.7853982 }
 0x13c   :  { %v793_v23 = vadd.s32 4294967169, %v192_v22  ;;  %v196_v47 = vor.u32 8388608, %v195_v28 }
 0x13e   :  { %v198_v24 = vadd.s32 1, %v793_v23  ;;  %v236_v61 = vshll.u32 %v196_v47, 8 }
 0x140   :  { %vm199_vm4 = vcmp.gt.s32.totalorder %v198_v24, 0 }
 0x141   :  { %v200_v26 = vsel %vm199_vm4, %v198_v24, 0 }
 0x142   :  { %v202_v27 = vand.u32 31, %v200_v26  ;;  %v201_v30 = vshrl.u32 %v200_v26, 5 }
 0x144   :  { %v203_v29 = vsub.s32 32, %v202_v27  ;;  %v205_v32 = vshll.u32 %v1123_v31, %v202_v27  ;;  %v208_v34 = vshll.u32 %v1124_v33, %v202_v27  ;;  %v211_v38 = vshll.u32 %v1125_v36, %v202_v27 }
 0x145   :  { %v214_v41 = vshll.u32 %v1126_v39, %v202_v27  ;;  %v217_v44 = vshll.u32 %v1127_v42, %v202_v27  ;;  %vm220_vm5 = vcmp.lt.s32.totalorder %v201_v30, 1  ;;  %vm223_vm6 = vcmp.lt.s32.totalorder %v201_v30, 4 }
 0x146   :  { %v206_v35 = vshrl.u32 %v1124_v33, %v203_v29  ;;  %v209_v37 = vshrl.u32 %v1125_v36, %v203_v29  ;;  %v212_v40 = vshrl.u32 %v1126_v39, %v203_v29  ;;  %v215_v43 = vshrl.u32 %v1127_v42, %v203_v29 }
 0x147   :  { %v218_v46 = vshrl.u32 %v1128_v45, %v203_v29  ;;  %v204_v56 = vshrl.u32 %v1123_v31, %v203_v29  ;;  %vm222_vm7 = vcmp.lt.s32.totalorder %v201_v30, 3  ;;  %vm221_vm8 = vcmp.lt.s32.totalorder %v201_v30, 2 }
 0x148   :  { %v207_v48 = vor.u32 %v206_v35, %v205_v32  ;;  %v210_v49 = vor.u32 %v209_v37, %v208_v34  ;;  %v213_v50 = vor.u32 %v212_v40, %v211_v38  ;;  %v216_v51 = vor.u32 %v215_v43, %v214_v41 }
 0x149   :  { %v219_v52 = vor.u32 %v218_v46, %v217_v44 }
 0x14a   :  { %v225_v53 = vsel %vm223_vm6, %v213_v50, 2102212464  ;;  %v228_v54 = vsel %vm220_vm5, %v207_v48, %v210_v49  ;;  %v232_v55 = vsel %vm220_vm5, %v210_v49, %v213_v50  ;;  %v229_v57 = vsel %vm223_vm6, %v216_v51, 920167782 }
 0x14b   :  { %v233_v58 = vsel %vm223_vm6, %v219_v52, 1326507024  ;;  %v230_v59 = vsel %vm222_vm7, %v213_v50, %v229_v57  ;;  %v224_v62 = vsel %vm220_vm5, %v204_v56, %v207_v48  ;;  %v226_v63 = vsel %vm222_vm7, %v210_v49, %v225_v53  ;;  %v488_v57 = vld [vmem:[#allocation8] sm:$0xff] }
 0x14c   :  { %v234_v60 = vsel %vm222_vm7, %v216_v51, %v233_v58  ;;  %v231_v2 = vsel %vm221_vm8, %v228_v54, %v230_v59  ;;  %v227_v8 = vsel %vm221_vm8, %v224_v62, %v226_v63  ;;  %v489_v58 = vld [vmem:[#allocation8 + $0x8] sm:$0xff]  ;;  %v490_v59 = vld [vmem:[#allocation8 + $0x10] sm:$0xff]  ;;  %v492_v63 = vld [vmem:[#allocation8 + $0x20] sm:$0xff] }
 0x14d   :  { %v235_v3 = vsel %vm221_vm8, %v232_v55, %v234_v60  ;;  %v1290_v6 = vmul.u32.u64.low %v236_v61, %v231_v2  ;;  %v1291_v7 = vmul.u32.u64.high %v236_v61, %v231_v2, %v1290_v6  ;;  %v243_v10 = vmul.u32 %v236_v61, %v227_v8  ;;  %v493_v2 = vld [vmem:[#allocation8 + $0x28] sm:$0xff] }
 0x14e   :  { %v1287_v4 = vmul.u32.u64.low %v236_v61, %v235_v3  ;;  %v1288_v5 = vmul.u32.u64.high %v236_v61, %v235_v3, %v1287_v4  ;;  %v915_v60 = vpack.c.bf16 %v489_v58, %v488_v57  ;;  %v491_v61 = vld [vmem:[#allocation8 + $0x18] sm:$0xff]  ;;  %v494_v3 = vld [vmem:[#allocation8 + $0x30] sm:$0x3] }
 0x14f   :  { %v246_v9 = vadd.s32 1, %v1291_v7  ;;  %v918_v62 = vpack.c.bf16 %v491_v61, %v490_v59  ;;  %v797_v4 = vld [vmem:[%s1404_s4] ss:$0 sm:$0xff] }
 0x150   :  { %vm245_vm9 = vc.u32 %v1288_v5, %v1290_v6  ;;  %v244_v23 = vadd.s32 %v1290_v6, %v1288_v5  ;;  %916 = vmatpush3.bf16.msra.mxu0 %v915_v60 }
 0x151   :  { %v247_v11 = vsel %vm245_vm9, %v246_v9, %v1291_v7  ;;  %917 = vmatprep.subr.bf16.mxu0 %v1120_v0 }
 0x152   :  { %v248_v12 = vadd.s32 %v247_v11, %v243_v10 }
 0x154   :  { %v249_v13 = vadd.s32 536870912, %v248_v12  ;;  %919 = vmatpush3.bf16.msra.mxu0 %v918_v62 }
 0x155   :  { %920 = vmatprep.subr.bf16.mxu0 %v1120_v0 }
 0x156   :  { %v250_v14 = vshrl.u32 %v249_v13, 30 }
 0x158   :  { %v251_v15 = vshll.u32 %v250_v14, 30  ;;  %v274_v40 = vsub.s32 4, %v250_v14 }
 0x15a   :  { %v252_v16 = vsub.s32 %v248_v12, %v251_v15  ;;  %v275_v44 = vsel %vm190_vm11, %v274_v40, %v250_v14 }
 0x15b   :  { %v277_v47 = vsel %vm189_vm12, 0, %v275_v44 }
 0x15c   :  { %v254_v17 = vsub.s32 0, %v252_v16  ;;  %v281_v48 = vadd.s32 3, %v277_v47 }
 0x15e   :  { %v794_v18 = vmin.u32 %v254_v17, %v252_v16  ;;  %v282_v49 = vand.u32 3, %v281_v48 }
 0x160   :  { %v256_v20 = vclz %v794_v18  ;;  %vm287_vm13 = vcmp.eq.s32.totalorder %v282_v49, 2  ;;  %vm284_vm14 = vcmp.eq.s32.totalorder %v282_v49, 0  ;;  %vm283_vm15 = vcmp.lt.s32.totalorder %v282_v49, 2 }
 0x162   :  { %v795_v21 = vadd.s32 4294967294, %v256_v20 }
 0x164   :  { %vm796_vm10 = vcmp.lt.s32.totalorder %v795_v21, 0 }
 0x165   :  { %v259_v22 = vsel %vm796_vm10, 0, %v795_v21 }
 0x166   :  { %v260_v24 = vsub.s32 32, %v259_v22  ;;  %v264_v26 = vsub.s32 4294967266, %v259_v22  ;;  %v261_v27 = vshll.u32 %v252_v16, %v259_v22 }
 0x168   :  { %v262_v28 = vshrl.u32 %v244_v23, %v260_v24  ;;  %v265_v29 = vadd.s32 127, %v264_v26 }
 0x16a   :  { %v263_v30 = vor.u32 %v262_v28, %v261_v27  ;;  %v266_v32 = vshll.u32 %v265_v29, 23 }
 0x16c   :  { %v267_v34 = vor.u32 4788187, %v266_v32  ;;  %v270_v37 = vcvt.s32.f32 %v263_v30 }
 0x16e   :  { %v268_v35 = vand.u32 2147483647, %v267_v34 }
 0x170   :  { %v271_v38 = vmul.f32 %v270_v37, %v268_v35 }
 0x172   :  { %v272_v41 = vxor.u32 2147483648, %v271_v38 }
 0x174   :  { %v273_v43 = vsel %vm190_vm11, %v272_v41, %v271_v38 }
 0x175   :  { %v276_v46 = vsel %vm189_vm12, %v1270_v19, %v273_v43  ;;  %v921_v19 = vpack.c.bf16 %v493_v2, %v492_v63 }
 0x176   :  { %961 = vcosq.f32 %v276_v46 }
 0x177   :  { %963 = vsinq.f32 %v276_v46  ;;  %922 = vmatpush3.bf16.msra.mxu0 %v921_v19 }
 0x178   :  { %880 = vmatprep.subr.mxu0 %v1122_v1 }
 0x17b   :  { %881 = vmatpush3.msk.msra.mxu0 %vm310_vm3, %v494_v3 }
 0x180   :  { %v962_v50 = vpop.eup %961 }
 0x181   :  { %v964_v51 = vpop.eup %963  ;;  %v288_v52 = vxor.u32 2147483648, %v962_v50 }
 0x182   :  { %v285_v53 = vxor.u32 2147483648, %v964_v51 }
 0x183   :  { %v289_v54 = vsel %vm287_vm13, %v288_v52, %v964_v51 }
 0x184   :  { %v286_v55 = vsel %vm284_vm14, %v962_v50, %v285_v53 }
 0x185   :  { %v290_v25 = vsel %vm283_vm15, %v286_v55, %v289_v54 }
 0x186   :  { %v291_v56 = vsel %vm280_vm2, nan, %v290_v25 }
 0x187   :  { %866 = vmatmul.mubr.msk.f32.vlgmr.msra.gmra.mrb[0].mxu1 %vm306_vm1, %v291_v56 }
 0x188   :  { %899 = vmatprep.mubr.msk.f32.mxu1 %vm1121_vm0, %v1122_v1 }
 0x25a   :  { %v380_v5 = vpop.f32.mrb[0].mxu1 }
 0x25b   :  { %v1312_v6 = vadd.f32 %v797_v4, %v380_v5  ;;  %v867_v7 = vpop.f32.mrb[1].mxu1 }
 0x25d   :  { %v387_v8 = vand.u32 2139095040, %v1312_v6  ;;  %v384_v12 = vand.u32 2147483647, %v1312_v6  ;;  %vm386_vm10 = vcmp.lt.s32.totalorder %v1312_v6, 0  ;;  %vm476_vm15 = vweird.f32 %v1312_v6 }
 0x25f   :  { %v388_v9 = vshrl.u32 %v387_v8, 23  ;;  %v391_v15 = vand.u32 8388607, %v384_v12  ;;  %vm385_vm11 = vcmp.le.f32.partialorder %v384_v12, 0.7853982 }
 0x261   :  { %v800_v10 = vadd.s32 4294967169, %v388_v9  ;;  %v392_v30 = vor.u32 8388608, %v391_v15 }
 0x263   :  { %v394_v11 = vadd.s32 1, %v800_v10  ;;  %v432_v50 = vshll.u32 %v392_v30, 8 }
 0x265   :  { %vm395_vm0 = vcmp.gt.s32.totalorder %v394_v11, 0 }
 0x266   :  { %v396_v13 = vsel %vm395_vm0, %v394_v11, 0 }
 0x267   :  { %v398_v14 = vand.u32 31, %v396_v13  ;;  %v397_v17 = vshrl.u32 %v396_v13, 5 }
 0x269   :  { %v399_v16 = vsub.s32 32, %v398_v14  ;;  %v401_v18 = vshll.u32 %v1123_v31, %v398_v14  ;;  %v404_v20 = vshll.u32 %v1124_v33, %v398_v14  ;;  %v407_v23 = vshll.u32 %v1125_v36, %v398_v14 }
 0x26a   :  { %v410_v26 = vshll.u32 %v1126_v39, %v398_v14  ;;  %v413_v28 = vshll.u32 %v1127_v42, %v398_v14  ;;  %vm416_vm4 = vcmp.lt.s32.totalorder %v397_v17, 1  ;;  %vm419_vm5 = vcmp.lt.s32.totalorder %v397_v17, 4 }
 0x26b   :  { %v402_v21 = vshrl.u32 %v1124_v33, %v399_v16  ;;  %v405_v22 = vshrl.u32 %v1125_v36, %v399_v16  ;;  %v408_v24 = vshrl.u32 %v1126_v39, %v399_v16  ;;  %v411_v27 = vshrl.u32 %v1127_v42, %v399_v16 }
 0x26c   :  { %v414_v29 = vshrl.u32 %v1128_v45, %v399_v16  ;;  %v400_v44 = vshrl.u32 %v1123_v31, %v399_v16  ;;  %vm418_vm6 = vcmp.lt.s32.totalorder %v397_v17, 3  ;;  %vm417_vm7 = vcmp.lt.s32.totalorder %v397_v17, 2 }
 0x26d   :  { %v403_v32 = vor.u32 %v402_v21, %v401_v18  ;;  %v406_v34 = vor.u32 %v405_v22, %v404_v20  ;;  %v409_v35 = vor.u32 %v408_v24, %v407_v23  ;;  %v412_v37 = vor.u32 %v411_v27, %v410_v26 }
 0x26e   :  { %v415_v38 = vor.u32 %v414_v29, %v413_v28 }
 0x26f   :  { %v421_v40 = vsel %vm419_vm5, %v409_v35, 2102212464  ;;  %v424_v41 = vsel %vm416_vm4, %v403_v32, %v406_v34  ;;  %v428_v43 = vsel %vm416_vm4, %v406_v34, %v409_v35  ;;  %v425_v46 = vsel %vm419_vm5, %v412_v37, 920167782 }
 0x270   :  { %v429_v47 = vsel %vm419_vm5, %v415_v38, 1326507024  ;;  %v426_v48 = vsel %vm418_vm6, %v409_v35, %v425_v46  ;;  %v420_v51 = vsel %vm416_vm4, %v400_v44, %v403_v32  ;;  %v422_v52 = vsel %vm418_vm6, %v406_v34, %v421_v40  ;;  %v682_v46 = vld [vmem:[#allocation10] sm:$0xff] }
 0x271   :  { %v430_v49 = vsel %vm418_vm6, %v412_v37, %v429_v47  ;;  %v427_v53 = vsel %vm417_vm7, %v424_v41, %v426_v48  ;;  %v423_v58 = vsel %vm417_vm7, %v420_v51, %v422_v52  ;;  %v683_v47 = vld [vmem:[#allocation10 + $0x8] sm:$0xff]  ;;  %v684_v48 = vld [vmem:[#allocation10 + $0x10] sm:$0xff]  ;;  %v686_v52 = vld [vmem:[#allocation10 + $0x20] sm:$0xff] }
 0x272   :  { %v431_v54 = vsel %vm417_vm7, %v428_v43, %v430_v49  ;;  %v1332_v56 = vmul.u32.u64.low %v432_v50, %v427_v53  ;;  %v1333_v57 = vmul.u32.u64.high %v432_v50, %v427_v53, %v1332_v56  ;;  %v439_v60 = vmul.u32 %v432_v50, %v423_v58  ;;  %v687_v53 = vld [vmem:[#allocation10 + $0x28] sm:$0xff] }
 0x273   :  { %v1329_v55 = vmul.u32.u64.low %v432_v50, %v431_v54  ;;  %v1330_v25 = vmul.u32.u64.high %v432_v50, %v431_v54, %v1329_v55  ;;  %v924_v49 = vpack.c.bf16 %v683_v47, %v682_v46  ;;  %v685_v50 = vld [vmem:[#allocation10 + $0x18] sm:$0xff]  ;;  %v930_v54 = vpack.c.bf16 %v687_v53, %v686_v52 }
 0x274   :  { %v442_v59 = vadd.s32 1, %v1333_v57  ;;  %v927_v51 = vpack.c.bf16 %v685_v50, %v684_v48  ;;  %v804_v55 = vld [vmem:[%s1406_s6] ss:$0 sm:$0xff] }
 0x275   :  { %vm441_vm8 = vc.u32 %v1330_v25, %v1332_v56  ;;  %v440_v10 = vadd.s32 %v1332_v56, %v1330_v25  ;;  %925 = vmatpush3.bf16.msra.mxu1 %v924_v49 }
 0x276   :  { %v443_v61 = vsel %vm441_vm8, %v442_v59, %v1333_v57  ;;  %926 = vmatprep.subr.bf16.mxu1 %v1120_v0 }
 0x277   :  { %v444_v62 = vadd.s32 %v443_v61, %v439_v60 }
 0x279   :  { %v445_v63 = vadd.s32 536870912, %v444_v62  ;;  %928 = vmatpush3.bf16.msra.mxu1 %v927_v51 }
 0x27a   :  { %929 = vmatprep.subr.bf16.mxu1 %v1120_v0 }
 0x27b   :  { %v446_v2 = vshrl.u32 %v445_v63, 30 }
 0x27d   :  { %v447_v19 = vshll.u32 %v446_v2, 30  ;;  %v470_v24 = vsub.s32 4, %v446_v2  ;;  %931 = vmatpush3.bf16.msra.mxu1 %v930_v54 }
 0x27e   :  { %897 = vmatprep.subr.mxu1 %v1122_v1 }
 0x27f   :  { %v448_v3 = vsub.s32 %v444_v62, %v447_v19  ;;  %v471_v28 = vsel %vm386_vm10, %v470_v24, %v446_v2 }
 0x280   :  { %v473_v30 = vsel %vm385_vm11, 0, %v471_v28 }
 0x281   :  { %v450_v4 = vsub.s32 0, %v448_v3  ;;  %v477_v32 = vadd.s32 3, %v473_v30 }
 0x283   :  { %v801_v5 = vmin.u32 %v450_v4, %v448_v3  ;;  %v478_v34 = vand.u32 3, %v477_v32 }
 0x285   :  { %v452_v7 = vclz %v801_v5  ;;  %vm483_vm12 = vcmp.eq.s32.totalorder %v478_v34, 2  ;;  %vm480_vm13 = vcmp.eq.s32.totalorder %v478_v34, 0  ;;  %vm479_vm14 = vcmp.lt.s32.totalorder %v478_v34, 2 }
 0x287   :  { %v802_v8 = vadd.s32 4294967294, %v452_v7 }
 0x289   :  { %vm803_vm9 = vcmp.lt.s32.totalorder %v802_v8, 0 }
 0x28a   :  { %v455_v9 = vsel %vm803_vm9, 0, %v802_v8 }
 0x28b   :  { %v456_v11 = vsub.s32 32, %v455_v9  ;;  %v460_v13 = vsub.s32 4294967266, %v455_v9  ;;  %v457_v14 = vshll.u32 %v448_v3, %v455_v9 }
 0x28d   :  { %v458_v15 = vshrl.u32 %v440_v10, %v456_v11  ;;  %v461_v16 = vadd.s32 127, %v460_v13 }
 0x28f   :  { %v459_v17 = vor.u32 %v458_v15, %v457_v14  ;;  %v462_v18 = vshll.u32 %v461_v16, 23 }
 0x291   :  { %v463_v20 = vor.u32 4788187, %v462_v18  ;;  %v466_v22 = vcvt.s32.f32 %v459_v17 }
 0x293   :  { %v464_v21 = vand.u32 2147483647, %v463_v20 }
 0x295   :  { %v467_v23 = vmul.f32 %v466_v22, %v464_v21 }
 0x297   :  { %v468_v26 = vxor.u32 2147483648, %v467_v23 }
 0x299   :  { %v469_v27 = vsel %vm386_vm10, %v468_v26, %v467_v23 }
 0x29a   :  { %v472_v29 = vsel %vm385_vm11, %v1312_v6, %v469_v27  ;;  %v688_v6 = vld [vmem:[#allocation10 + $0x30] sm:$0x3] }
 0x29b   :  { %965 = vcosq.f32 %v472_v29  ;;  %898 = vmatpush3.msk.msra.mxu1 %vm310_vm3, %v688_v6 }
 0x29c   :  { %967 = vsinq.f32 %v472_v29 }
 0x2a5   :  { %v966_v35 = vpop.eup %965 }
 0x2a6   :  { %v968_v37 = vpop.eup %967  ;;  %v484_v38 = vxor.u32 2147483648, %v966_v35 }
 0x2a7   :  { %v481_v40 = vxor.u32 2147483648, %v968_v37 }
 0x2a8   :  { %v485_v41 = vsel %vm483_vm12, %v484_v38, %v968_v37 }
 0x2a9   :  { %v482_v43 = vsel %vm480_vm13, %v966_v35, %v481_v40 }
 0x2aa   :  { %v486_v12 = vsel %vm479_vm14, %v482_v43, %v485_v41 }
 0x2ab   :  { %v487_v44 = vsel %vm476_vm15, nan, %v486_v12 }
 0x2ac   :  { %883 = vmatmul.mubr.msk.f32.vlgmr.msra.gmra.mrb[2].mxu0 %vm306_vm1, %v487_v44 }
 0x37f   :  { %v574_v25 = vpop.f32.mrb[2].mxu0 }
 0x380   :  { %v1352_v56 = vadd.f32 %v804_v55, %v574_v25  ;;  %v884_v57 = vpop.f32.mrb[3].mxu0 }
 0x382   :  { %v581_v58 = vand.u32 2139095040, %v1352_v56  ;;  %v578_v0 = vand.u32 2147483647, %v1352_v56  ;;  %vm580_vm8 = vcmp.lt.s32.totalorder %v1352_v56, 0  ;;  %vm670_vm13 = vweird.f32 %v1352_v56 }
 0x384   :  { %v582_v59 = vshrl.u32 %v581_v58, 23  ;;  %v585_v63 = vand.u32 8388607, %v578_v0  ;;  %vm579_vm9 = vcmp.le.f32.partialorder %v578_v0, 0.7853982 }
 0x386   :  { %v807_v60 = vadd.s32 4294967169, %v582_v59  ;;  %v586_v15 = vor.u32 8388608, %v585_v63 }
 0x388   :  { %v588_v61 = vadd.s32 1, %v807_v60 }
 0x38a   :  { %vm589_vm2 = vcmp.gt.s32.totalorder %v588_v61, 0 }
 0x38b   :  { %v590_v1 = vsel %vm589_vm2, %v588_v61, 0 }
 0x38c   :  { %v592_v62 = vand.u32 31, %v590_v1  ;;  %v591_v19 = vshrl.u32 %v590_v1, 5 }
 0x38e   :  { %v593_v2 = vsub.s32 32, %v592_v62  ;;  %v595_v3 = vshll.u32 %v1123_v31, %v592_v62  ;;  %v598_v4 = vshll.u32 %v1124_v33, %v592_v62  ;;  %v601_v8 = vshll.u32 %v1125_v36, %v592_v62 }
 0x38f   :  { %v604_v10 = vshll.u32 %v1126_v39, %v592_v62  ;;  %v607_v13 = vshll.u32 %v1127_v42, %v592_v62  ;;  %vm610_vm3 = vcmp.lt.s32.totalorder %v591_v19, 1  ;;  %vm613_vm0 = vcmp.lt.s32.totalorder %v591_v19, 4 }
 0x390   :  { %v596_v5 = vshrl.u32 %v1124_v33, %v593_v2  ;;  %v599_v7 = vshrl.u32 %v1125_v36, %v593_v2  ;;  %v602_v9 = vshrl.u32 %v1126_v39, %v593_v2  ;;  %v605_v11 = vshrl.u32 %v1127_v42, %v593_v2 }
 0x391   :  { %v608_v14 = vshrl.u32 %v1128_v45, %v593_v2  ;;  %v594_v23 = vshrl.u32 %v1123_v31, %v593_v2  ;;  %vm612_vm4 = vcmp.lt.s32.totalorder %v591_v19, 3  ;;  %vm611_vm5 = vcmp.lt.s32.totalorder %v591_v19, 2 }
 0x392   :  { %v597_v16 = vor.u32 %v596_v5, %v595_v3  ;;  %v600_v17 = vor.u32 %v599_v7, %v598_v4  ;;  %v603_v18 = vor.u32 %v602_v9, %v601_v8  ;;  %v606_v20 = vor.u32 %v605_v11, %v604_v10 }
 0x393   :  { %v609_v33 = vor.u32 %v608_v14, %v607_v13  ;;  %v626_v45 = vshll.u32 %v586_v15, 8 }
 0x394   :  { %v615_v21 = vsel %vm613_vm0, %v603_v18, 2102212464  ;;  %v618_v36 = vsel %vm610_vm3, %v597_v16, %v600_v17  ;;  %v622_v22 = vsel %vm610_vm3, %v600_v17, %v603_v18  ;;  %v619_v39 = vsel %vm613_vm0, %v606_v20, 920167782 }
 0x395   :  { %v623_v24 = vsel %vm613_vm0, %v609_v33, 1326507024  ;;  %v620_v42 = vsel %vm612_vm4, %v603_v18, %v619_v39  ;;  %v614_v27 = vsel %vm610_vm3, %v594_v23, %v597_v16  ;;  %v616_v28 = vsel %vm612_vm4, %v600_v17, %v615_v21  ;;  %v811_v17 = vld [vmem:[%s1408_s8] ss:$0 sm:$0xff] }
 0x396   :  { %v624_v26 = vsel %vm612_vm4, %v606_v20, %v623_v24  ;;  %v621_v29 = vsel %vm611_vm5, %v618_v36, %v620_v42  ;;  %v617_v38 = vsel %vm611_vm5, %v614_v27, %v616_v28 }
 0x397   :  { %v625_v30 = vsel %vm611_vm5, %v622_v22, %v624_v26  ;;  %v1372_v35 = vmul.u32.u64.low %v626_v45, %v621_v29  ;;  %v1373_v37 = vmul.u32.u64.high %v626_v45, %v621_v29, %v1372_v35  ;;  %v633_v40 = vmul.u32 %v626_v45, %v617_v38 }
 0x398   :  { %v1369_v32 = vmul.u32.u64.low %v626_v45, %v625_v30  ;;  %v1370_v34 = vmul.u32.u64.high %v626_v45, %v625_v30, %v1369_v32 }
 0x399   :  { %v636_v31 = vadd.s32 1, %v1373_v37 }
 0x39a   :  { %vm635_vm6 = vc.u32 %v1370_v34, %v1372_v35  ;;  %v634_v53 = vadd.s32 %v1372_v35, %v1370_v34 }
 0x39b   :  { %v637_v41 = vsel %vm635_vm6, %v636_v31, %v1373_v37 }
 0x39c   :  { %v638_v43 = vadd.s32 %v637_v41, %v633_v40 }
 0x39e   :  { %v639_v12 = vadd.s32 536870912, %v638_v43 }
 0x3a0   :  { %v640_v44 = vshrl.u32 %v639_v12, 30 }
 0x3a2   :  { %v641_v46 = vshll.u32 %v640_v44, 30  ;;  %v664_v63 = vsub.s32 4, %v640_v44 }
 0x3a4   :  { %v642_v47 = vsub.s32 %v638_v43, %v641_v46  ;;  %v665_v3 = vsel %vm580_vm8, %v664_v63, %v640_v44 }
 0x3a5   :  { %v667_v5 = vsel %vm579_vm9, 0, %v665_v3 }
 0x3a6   :  { %v644_v48 = vsub.s32 0, %v642_v47  ;;  %v671_v7 = vadd.s32 3, %v667_v5 }
 0x3a8   :  { %v808_v49 = vmin.u32 %v644_v48, %v642_v47  ;;  %v672_v8 = vand.u32 3, %v671_v7 }
 0x3aa   :  { %v646_v50 = vclz %v808_v49  ;;  %vm677_vm10 = vcmp.eq.s32.totalorder %v672_v8, 2  ;;  %vm674_vm11 = vcmp.eq.s32.totalorder %v672_v8, 0  ;;  %vm673_vm12 = vcmp.lt.s32.totalorder %v672_v8, 2 }
 0x3ac   :  { %v809_v51 = vadd.s32 4294967294, %v646_v50 }
 0x3ae   :  { %vm810_vm7 = vcmp.lt.s32.totalorder %v809_v51, 0 }
 0x3af   :  { %v649_v52 = vsel %vm810_vm7, 0, %v809_v51 }
 0x3b0   :  { %v650_v54 = vsub.s32 32, %v649_v52  ;;  %v654_v6 = vsub.s32 4294967266, %v649_v52  ;;  %v651_v55 = vshll.u32 %v642_v47, %v649_v52 }
 0x3b2   :  { %v652_v25 = vshrl.u32 %v634_v53, %v650_v54  ;;  %v655_v57 = vadd.s32 127, %v654_v6 }
 0x3b4   :  { %v653_v58 = vor.u32 %v652_v25, %v651_v55  ;;  %v656_v59 = vshll.u32 %v655_v57, 23 }
 0x3b6   :  { %v657_v60 = vor.u32 4788187, %v656_v59  ;;  %v660_v1 = vcvt.s32.f32 %v653_v58 }
 0x3b8   :  { %v658_v61 = vand.u32 2147483647, %v657_v60 }
 0x3ba   :  { %v661_v62 = vmul.f32 %v660_v1, %v658_v61 }
 0x3bc   :  { %v662_v2 = vxor.u32 2147483648, %v661_v62 }
 0x3be   :  { %v663_v19 = vsel %vm580_vm8, %v662_v2, %v661_v62 }
 0x3bf   :  { %v666_v4 = vsel %vm579_vm9, %v1352_v56, %v663_v19 }
 0x3c0   :  { %969 = vcosq.f32 %v666_v4 }
 0x3c1   :  { %971 = vsinq.f32 %v666_v4 }
 0x3ca   :  { %v970_v9 = vpop.eup %969 }
 0x3cb   :  { %v972_v10 = vpop.eup %971  ;;  %v678_v11 = vxor.u32 2147483648, %v970_v9 }
 0x3cc   :  { %v675_v13 = vxor.u32 2147483648, %v972_v10 }
 0x3cd   :  { %v679_v14 = vsel %vm677_vm10, %v678_v11, %v972_v10 }
 0x3ce   :  { %v676_v15 = vsel %vm674_vm11, %v970_v9, %v675_v13 }
 0x3cf   :  { %v680_v0 = vsel %vm673_vm12, %v676_v15, %v679_v14 }
 0x3d0   :  { %v681_v16 = vsel %vm670_vm13, nan, %v680_v0 }
 0x3d1   :  { %900 = vmatmul.mubr.msk.f32.vlgmr.msra.gmra.mrb[2].mxu1 %vm306_vm1, %v681_v16 }
 0x4a4   :  { %v768_v18 = vpop.f32.mrb[2].mxu1 }
 0x4a5   :  { %v769_v20 = vadd.f32 %v811_v17, %v768_v18  ;;  %v901_v33 = vpop.f32.mrb[3].mxu1 }
 0x4a7   :  { %772 = vst [vmem:[#allocation11] sm:$0xff] %v769_v20 }
 0x4a8   :  { %1094 = shalt.err (!%p1091_p2)
}
 0x4a9   :  { %s1095_s10 = scalar_lea.hbm %s1409_s9, 128 }
 0x4aa   :  { %p1096_p3 = scmp.ne.s32.totalorder %s1409_s9, %s1095_s10  ;;  %p1099_p4 = scmp.lt.u32.totalorder %s1095_s10, %s1409_s9 }
 0x4ac   :  { %p1101_p5 = pnand %p1099_p4, %p1096_p3 }
 0x4ae   :  { %1104 = shalt.err (!%p1101_p5)
}
 0x4af   :  { %782 = dma.vmem_to_hbm [thread:$0]  %s780_s11, 128, %s1409_s9, [#allocation4]  }
 0x4b0   :  { %1111 = dma.done.wait [#allocation4], 128  }
 0x4b1   :  { %1112 = vsyncadd [#allocation4], 4294967168 }
 0x4b2   :  { %786 = vsyncpa [#allocation3], 1 }
 0x4b3   :  { %787 = vsyncpa [#allocation6], 1 }
 0x4b4   :  { %788 = vsyncpa [#allocation9], 1 }
 0x4b5   :  { %789 = vsyncpa [#allocation4], 1 }

</bundles_post_ra>
